<compile_context>
chip_gen: v7x
topology: tpu7x:2x2x1
jax: 0.10.0
libtpu: 0.0.40
codegen_flags: <defaults>
</compile_context>

<pallas_src>
import functools

import jax
import jax.numpy as jnp
from jax.experimental import pallas as pl
from jax.experimental.pallas import tpu as pltpu


# ----------------------------- VMEM budgeting helpers -----------------------------
def _vmem_config():
    """Generation-gated (tile_budget_bytes, vmem_limit_bytes)."""
    cap = 0
    try:
        info = pltpu.get_tpu_info()
        cap = int(getattr(info, "vmem_capacity_bytes", 0) or 0)
    except Exception:
        cap = 0
    if cap >= 96 * 1024 * 1024:                      # 128 MiB VMEM parts (v5e / v6e)
        return 48 * 1024 * 1024, 96 * 1024 * 1024
    return 16 * 1024 * 1024, 40 * 1024 * 1024        # 64 MiB VMEM parts (v7x) / unknown


def _choose_hw_tile(HW, per_elem_bytes, budget_bytes):
    """Largest lane tile (multiple of 128, or the full extent) within budget."""
    t = budget_bytes // max(per_elem_bytes, 1)
    if t >= HW:
        return HW
    return max(128, (t // 128) * 128)


def _choose_conv_row_tile(H, W, budget_bytes):
    """Row tile for the conv kernel: a divisor of H that is a multiple of 8 (or H)."""
    target = max(8, min(256, budget_bytes // max(64 * W, 1)))
    if target >= H:
        return H
    cands = [d for d in range(8, H, 8) if H % d == 0 and d <= target]
    return max(cands) if cands else H


def _weight_index_map(batched):
    if batched:
        return lambda b, t: (b, 0, t)
    return lambda b, t: (0, 0, t)       # broadcast batch dim: reuse the same block


# --------------------------- Kernel A: channel attention ---------------------------
def _ca_kernel(x1_ref, x2_ref, w1_ref, w2_ref, fc1_ref, fc2_ref, att_ref,
               sum1, sum2, mx1, mx2, *, hw_total, hw_tile):
    f32 = jnp.float32
    t = pl.program_id(1)
    nt = pl.num_programs(1)

    @pl.when(t == 0)
    def _init():
        sum1[...] = jnp.zeros_like(sum1)
        sum2[...] = jnp.zeros_like(sum2)
        mx1[...] = jnp.full_like(mx1, -jnp.inf)
        mx2[...] = jnp.full_like(mx2, -jnp.inf)

    y1 = x1_ref[0].astype(f32) * w1_ref[0]            # (C, T)  x1 * weight1 (pixel-wise)
    y2 = x2_ref[0].astype(f32) * w2_ref[0]            # (C, T)  x2 * weight2

    def _accum(s1, s2, m1, m2):
        sum1[...] += jnp.sum(s1, axis=-1, keepdims=True)
        sum2[...] += jnp.sum(s2, axis=-1, keepdims=True)
        mx1[...] = jnp.maximum(mx1[...], jnp.max(m1, axis=-1, keepdims=True))
        mx2[...] = jnp.maximum(mx2[...], jnp.max(m2, axis=-1, keepdims=True))

    if hw_total % hw_tile == 0:
        _accum(y1, y2, y1, y2)
    else:
        # Only the LAST tile is partial: keep every other tile on the unmasked path.
        @pl.when(t < nt - 1)
        def _fast():
            _accum(y1, y2, y1, y2)

        @pl.when(t == nt - 1)
        def _tail():
            lane = jax.lax.broadcasted_iota(jnp.int32, y1.shape, 1)
            valid = (t * hw_tile + lane) < hw_total
            _accum(jnp.where(valid, y1, 0.0), jnp.where(valid, y2, 0.0),
                   jnp.where(valid, y1, -jnp.inf), jnp.where(valid, y2, -jnp.inf))

    @pl.when(t == nt - 1)
    def _finalize():
        inv_hw = 1.0 / float(hw_total)
        a1 = sum1[...] * inv_hw                        # (C, 1) avg-pool of x1*w1
        a2 = sum2[...] * inv_hw
        m1 = mx1[...]
        m2 = mx2[...]
        # Batch avg/max paths AND both modality orderings into one matmul pair:
        #   col0=cat(a1,a2) col1=cat(m1,m2)  -> ca(x1, x2)
        #   col2=cat(a2,a1) col3=cat(m2,m1)  -> ca(x2, x1)
        top = jnp.concatenate([a1, m1, a2, m2], axis=1)       # (C, 4)
        bot = jnp.concatenate([a2, m2, a1, m1], axis=1)       # (C, 4)
        pooled = jnp.concatenate([top, bot], axis=0)          # (2C, 4)
        h = jnp.maximum(
            jnp.dot(fc1_ref[...], pooled, preferred_element_type=f32), 0.0)
        o = jnp.dot(fc2_ref[...], h, preferred_element_type=f32)       # (C, 4)
        att1 = jax.nn.sigmoid(o[:, 0:1] + o[:, 1:2])
        att2 = jax.nn.sigmoid(o[:, 2:3] + o[:, 3:4])
        att_ref[0] = jnp.concatenate([att1, att2], axis=1).astype(att_ref.dtype)


# ------------------ Kernel B: spatial-attention input maps (4 channels) ------------------
def _sa_input_kernel(x1_ref, x2_ref, w1_ref, w2_ref, att_ref, o_ref):
    f32 = jnp.float32
    a1 = att_ref[0, :, 0:1]                            # (C, 1) channel attention, mod 1
    a2 = att_ref[0, :, 1:2]
    y1 = (x1_ref[0].astype(f32) * a1) * w1_ref[0]      # x1_ca * weight1, (C, T)
    y2 = (x2_ref[0].astype(f32) * a2) * w2_ref[0]      # x2_ca * weight2, (C, T)
    # Direct sublane-slice stores (no cross-sublane concat before the store).
    o_ref[0, 0:1, :] = jnp.mean(y1, axis=0, keepdims=True)
    o_ref[0, 1:2, :] = jnp.max(y1, axis=0, keepdims=True)
    o_ref[0, 2:3, :] = jnp.mean(y2, axis=0, keepdims=True)
    o_ref[0, 3:4, :] = jnp.max(y2, axis=0, keepdims=True)


# --------------- Kernel C: row-tiled 7x7 conv (4 -> 1) as banded MXU matmuls ---------------
def _sa_conv_kernel(sa_hbm, wband_ref, o_ref, xscr, sem, *, W, Rt, K, pad):
    f32 = jnp.float32
    b = pl.program_id(0)
    r = pl.program_id(1)
    nR = pl.num_programs(1)
    row0 = r * Rt

    # Fused zero padding: the halo rows with no source (image top / bottom) are zeroed
    # in the scratch; these regions never overlap the DMA destinations below.
    @pl.when(r == 0)
    def _zt():
        xscr[:, 0:pad, :] = jnp.zeros((4, pad, W), f32)

    @pl.when(r == nR - 1)
    def _zb():
        xscr[:, pad + Rt:pad + Rt + pad, :] = jnp.zeros((4, pad, W), f32)

    body_cp = pltpu.make_async_copy(
        sa_hbm.at[b, :, pl.ds(row0, Rt), :], xscr.at[:, pad:pad + Rt, :], sem.at[0])
    top_cp = pltpu.make_async_copy(
        sa_hbm.at[b, :, pl.ds(row0 - pad, pad), :], xscr.at[:, 0:pad, :], sem.at[1])
    bot_cp = pltpu.make_async_copy(
        sa_hbm.at[b, :, pl.ds(row0 + Rt, pad), :],
        xscr.at[:, pad + Rt:pad + Rt + pad, :], sem.at[2])

    body_cp.start()

    @pl.when(r > 0)
    def _st():
        top_cp.start()

    @pl.when(r < nR - 1)
    def _sb():
        bot_cp.start()

    body_cp.wait()

    @pl.when(r > 0)
    def _wt():
        top_cp.wait()

    @pl.when(r < nR - 1)
    def _wb():
        bot_cp.wait()

    # 28 small MXU matmuls: each (c, dy) row slab against a banded (W, 2W) weight that
    # encodes all dx taps for BOTH modality orderings (columns [0,W) and [W,2W)).
    acc = jnp.zeros((Rt, 2 * W), f32)
    for c in range(4):
        for dy in range(K):
            slab = xscr[c, dy:dy + Rt, :]                       # (Rt, W), sublane shift only
            acc = acc + jnp.dot(slab, wband_ref[c * K + dy],
                                preferred_element_type=f32)
    o_ref[0, 0] = jax.nn.sigmoid(acc[:, :W])
    o_ref[0, 1] = jax.nn.sigmoid(acc[:, W:])


# --------------------------- Kernel D: final refinement ---------------------------
def _refine_kernel(x1_ref, x2_ref, att_ref, sa_ref, o1_ref, o2_ref):
    f32 = jnp.float32
    a1 = att_ref[0, :, 0:1]                            # (C, 1) channel attention
    a2 = att_ref[0, :, 1:2]
    s1 = sa_ref[0, 0:1, :]                             # (1, T) spatial attention
    s2 = sa_ref[0, 1:2, :]
    o1_ref[0] = ((x1_ref[0].astype(f32) * a1) * s1).astype(o1_ref.dtype)
    o2_ref[0] = ((x2_ref[0].astype(f32) * a2) * s2).astype(o2_ref.dtype)


# ------------------------------------ wrapper ------------------------------------
def pixelwise_cross_modal_cbam(x1, x2, weight1, weight2, w_fc1, w_fc2, w_conv, *,
                               stream_dtype=jnp.bfloat16, hw_tile=None,
                               conv_row_tile=None):
    """Forward of PixelWiseCrossModalCBAM.

    x1, x2    : (B, C, H, W)
    weight1/2 : pixel-wise weight maps, (B,1,H,W) or (1,1,H,W) (broadcast batch dim kept)
    w_fc1     : (C//ratio, 2C)   Conv2d(2C, C//ratio, 1, bias=False) weight, squeezed
    w_fc2     : (C, C//ratio)
    w_conv    : (1, 4, K, K)     spatial-attention Conv2d(4, 1, K, padding=K//2) weight
    Returns (x1_refined, x2_refined), each (B, C, H, W) in `stream_dtype`
    (bf16 by default to halve HBM read/write traffic; pass jnp.float32 for exact I/O).
    """
    B, C, H, W = x1.shape
    HW = H * W
    hidden = w_fc1.shape[0]
    K = w_conv.shape[-1]
    pad = K // 2
    f32 = jnp.float32
    sdt = jnp.dtype(stream_dtype)
    sx = sdt.itemsize

    x1f = x1.astype(sdt).reshape(B, C, HW)
    x2f = x2.astype(sdt).reshape(B, C, HW)

    def _prep_weight(w):
        w = jnp.asarray(w, f32)
        wb = w.shape[0] if w.ndim == 4 else 1
        return w.reshape(wb, 1, HW), wb

    w1f, wb1 = _prep_weight(weight1)
    w2f, wb2 = _prep_weight(weight2)
    w_fc1 = jnp.asarray(w_fc1, f32)
    w_fc2 = jnp.asarray(w_fc2, f32)

    tile_budget, vmem_limit = _vmem_config()

    # Per-kernel lane-tile sizing (bytes per lane element, double-buffered).
    per_ab = 2 * (2 * C * sx + 2 * 4 + 4 * 4)     # x1,x2 in + w1,w2 in + (B) 4ch f32 out
    per_d = 2 * (4 * C * sx + 2 * 4)              # x1,x2 in + o1,o2 out + 2ch f32 sa
    if hw_tile is None:
        T_ab = _choose_hw_tile(HW, per_ab, tile_budget)
        T_d = _choose_hw_tile(HW, per_d, tile_budget)
    else:
        T_ab = T_d = min(int(hw_tile), HW)
        assert T_ab == HW or T_ab % 128 == 0, "hw_tile must be a multiple of 128"
    nT_ab = pl.cdiv(HW, T_ab)
    nT_d = pl.cdiv(HW, T_d)

    if conv_row_tile is None:
        Rt = _choose_conv_row_tile(H, W, tile_budget)
    else:
        Rt = int(conv_row_tile)
        assert H % Rt == 0 and (Rt % 8 == 0 or Rt == H), "bad conv_row_tile"
    nR = H // Rt

    cp_red = pltpu.CompilerParams(dimension_semantics=("parallel", "arbitrary"),
                                  vmem_limit_bytes=vmem_limit)
    cp_par = pltpu.CompilerParams(dimension_semantics=("parallel", "parallel"),
                                  vmem_limit_bytes=vmem_limit)

    # ---- A: channel attention for both modality orderings -> (B, C, 2) ----
    # (att block is revisited across the reduction axis and only written at the last t.)
    att = pl.pallas_call(
        functools.partial(_ca_kernel, hw_total=HW, hw_tile=T_ab),
        out_shape=jax.ShapeDtypeStruct((B, C, 2), f32),
        grid_spec=pltpu.PrefetchScalarGridSpec(
            num_scalar_prefetch=0,
            grid=(B, nT_ab),
            in_specs=[
                pl.BlockSpec((1, C, T_ab), lambda b, t: (b, 0, t)),
                pl.BlockSpec((1, C, T_ab), lambda b, t: (b, 0, t)),
                pl.BlockSpec((1, 1, T_ab), _weight_index_map(wb1 > 1)),
                pl.BlockSpec((1, 1, T_ab), _weight_index_map(wb2 > 1)),
                pl.BlockSpec((hidden, 2 * C), lambda b, t: (0, 0)),
                pl.BlockSpec((C, hidden), lambda b, t: (0, 0)),
            ],
            out_specs=pl.BlockSpec((1, C, 2), lambda b, t: (b, 0, 0)),
            scratch_shapes=[pltpu.VMEM((C, 1), f32)] * 4,
        ),
        compiler_params=cp_red,
    )(x1f, x2f, w1f, w2f, w_fc1, w_fc2)

    # ---- B: channel mean/max of x_ca * weight -> (B, 4, HW) ----
    sa_in = pl.pallas_call(
        _sa_input_kernel,
        out_shape=jax.ShapeDtypeStruct((B, 4, HW), f32),
        grid_spec=pltpu.PrefetchScalarGridSpec(
            num_scalar_prefetch=0,
            grid=(B, nT_ab),
            in_specs=[
                pl.BlockSpec((1, C, T_ab), lambda b, t: (b, 0, t)),
                pl.BlockSpec((1, C, T_ab), lambda b, t: (b, 0, t)),
                pl.BlockSpec((1, 1, T_ab), _weight_index_map(wb1 > 1)),
                pl.BlockSpec((1, 1, T_ab), _weight_index_map(wb2 > 1)),
                pl.BlockSpec((1, C, 2), lambda b, t: (b, 0, 0)),
            ],
            out_specs=pl.BlockSpec((1, 4, T_ab), lambda b, t: (b, 0, t)),
        ),
        compiler_params=cp_par,
    )(x1f, x2f, w1f, w2f, att)

    # ---- C: 7x7 conv (4->1) + sigmoid for BOTH orderings, row-tiled, MXU matmuls ----
    # Banded weight: band[c, dy, j, x] = w[c, dy, j - x + pad] for valid taps; columns
    # [W, 2W) hold the channel-permuted ([2,3,0,1]) weights for sa(x2_ca, x1_ca, ...).
    # Zero padding along W is implicit (out-of-range taps simply have no input column).
    # TODO(synk): for very large W, additionally tile the banded weight along the
    # output-W axis (it is (4K, W, 2W) and grows quadratically in W).
    wc = jnp.asarray(w_conv, f32).reshape(4, K, K)
    wc2 = wc[jnp.array([2, 3, 0, 1])]
    jj = jnp.arange(W)[:, None]                       # input column
    xx = jnp.arange(W)[None, :]                       # output column
    dx = jj - xx + pad
    valid = (dx >= 0) & (dx < K)
    dxc = jnp.clip(dx, 0, K - 1)
    band1 = jnp.where(valid[None, None], wc[:, :, dxc], 0.0)      # (4, K, W, W)
    band2 = jnp.where(valid[None, None], wc2[:, :, dxc], 0.0)
    wband = jnp.concatenate([band1, band2], axis=-1).reshape(4 * K, W, 2 * W)

    sa_in_4d = sa_in.reshape(B, 4, H, W)
    sa_maps = pl.pallas_call(
        functools.partial(_sa_conv_kernel, W=W, Rt=Rt, K=K, pad=pad),
        out_shape=jax.ShapeDtypeStruct((B, 2, H, W), f32),
        grid_spec=pltpu.PrefetchScalarGridSpec(
            num_scalar_prefetch=0,
            grid=(B, nR),
            in_specs=[
                pl.BlockSpec(memory_space=pl.ANY),                       # sa_in in HBM
                pl.BlockSpec((4 * K, W, 2 * W), lambda b, r: (0, 0, 0)),  # banded weight
            ],
            out_specs=pl.BlockSpec((1, 2, Rt, W), lambda b, r: (b, 0, r, 0)),
            scratch_shapes=[
                pltpu.VMEM((4, Rt + 2 * pad, W), f32),     # haloed row-tile scratch
                pltpu.SemaphoreType.DMA((3,)),
            ],
        ),
        compiler_params=cp_par,
    )(sa_in_4d, wband)

    # ---- D: x_refined = spatial_att * channel_att * x ----
    saf = sa_maps.reshape(B, 2, HW)
    out1, out2 = pl.pallas_call(
        _refine_kernel,
        out_shape=(jax.ShapeDtypeStruct((B, C, HW), sdt),
                   jax.ShapeDtypeStruct((B, C, HW), sdt)),
        grid_spec=pltpu.PrefetchScalarGridSpec(
            num_scalar_prefetch=0,
            grid=(B, nT_d),
            in_specs=[
                pl.BlockSpec((1, C, T_d), lambda b, t: (b, 0, t)),
                pl.BlockSpec((1, C, T_d), lambda b, t: (b, 0, t)),
                pl.BlockSpec((1, C, 2), lambda b, t: (b, 0, 0)),
                pl.BlockSpec((1, 2, T_d), lambda b, t: (b, 0, t)),
            ],
            out_specs=[
                pl.BlockSpec((1, C, T_d), lambda b, t: (b, 0, t)),
                pl.BlockSpec((1, C, T_d), lambda b, t: (b, 0, t)),
            ],
        ),
        compiler_params=cp_par,
    )(x1f, x2f, att, saf)

    return out1.reshape(B, C, H, W), out2.reshape(B, C, H, W)


# --------------------------- pure-JAX reference (PyTorch semantics) ---------------------------
def reference_forward(x1, x2, weight1, weight2, w_fc1, w_fc2, w_conv):
    def ca(a, b, wa, wb):
        ya, yb = a * wa, b * wb
        avg = jnp.concatenate([jnp.mean(ya, axis=(2, 3), keepdims=True),
                               jnp.mean(yb, axis=(2, 3), keepdims=True)], axis=1)
        mx = jnp.concatenate([jnp.max(ya, axis=(2, 3), keepdims=True),
                              jnp.max(yb, axis=(2, 3), keepdims=True)], axis=1)

        def mlp(v):
            h = jnp.maximum(jnp.einsum('oc,bcxy->boxy', w_fc1, v), 0.0)
            return jnp.einsum('oc,bcxy->boxy', w_fc2, h)

        return jax.nn.sigmoid(mlp(avg) + mlp(mx))

    def sa(a, b, wa, wb):
        ya, yb = a * wa, b * wb
        x = jnp.concatenate([jnp.mean(ya, axis=1, keepdims=True),
                             jnp.max(ya, axis=1, keepdims=True),
                             jnp.mean(yb, axis=1, keepdims=True),
                             jnp.max(yb, axis=1, keepdims=True)], axis=1)
        y = jax.lax.conv_general_dilated(
            x, w_conv, window_strides=(1, 1), padding='SAME',
            dimension_numbers=('NCHW', 'OIHW', 'NCHW'))
        return jax.nn.sigmoid(y)

    x1_ca = ca(x1, x2, weight1, weight2) * x1
    x2_ca = ca(x2, x1, weight2, weight1) * x2
    x1_r = sa(x1_ca, x2_ca, weight1, weight2) * x1_ca
    x2_r = sa(x2_ca, x1_ca, weight2, weight1) * x2_ca
    return x1_r, x2_r


def _run_case(name, B, C, H, W, ratio, *, stream_dtype, w_batched,
              hw_tile=None, conv_row_tile=None, atol=1e-4, rtol=1e-4):
    hidden = max(1, C // ratio)
    key = jax.random.PRNGKey(0)
    ks = jax.random.split(key, 7)
    x1 = jax.random.normal(ks[0], (B, C, H, W), dtype=jnp.float32)
    x2 = jax.random.normal(ks[1], (B, C, H, W), dtype=jnp.float32)
    wb = B if w_batched else 1
    weight1 = jax.random.uniform(ks[2], (wb, 1, H, W), jnp.float32, 0.5, 1.5)
    weight2 = jax.random.uniform(ks[3], (wb, 1, H, W), jnp.float32, 0.5, 1.5)
    w_fc1 = jax.random.normal(ks[4], (hidden, 2 * C), dtype=jnp.float32) * 0.1
    w_fc2 = jax.random.normal(ks[5], (C, hidden), dtype=jnp.float32) * 0.1
    w_conv = jax.random.normal(ks[6], (1, 4, 7, 7), dtype=jnp.float32) * 0.1

    out1, out2 = pixelwise_cross_modal_cbam(
        x1, x2, weight1, weight2, w_fc1, w_fc2, w_conv,
        stream_dtype=stream_dtype, hw_tile=hw_tile, conv_row_tile=conv_row_tile)
    out1 = jax.block_until_ready(out1)
    out2 = jax.block_until_ready(out2)
    assert out1.shape == (B, C, H, W) and out2.shape == (B, C, H, W)

    # Reference sees the same (possibly bf16-rounded) inputs that the kernel streams.
    x1r = x1.astype(stream_dtype).astype(jnp.float32)
    x2r = x2.astype(stream_dtype).astype(jnp.float32)
    ref1, ref2 = reference_forward(x1r, x2r, weight1, weight2, w_fc1, w_fc2, w_conv)
    o1 = out1.astype(jnp.float32)
    o2 = out2.astype(jnp.float32)
    e1 = float(jnp.max(jnp.abs(o1 - ref1)))
    e2 = float(jnp.max(jnp.abs(o2 - ref2)))
    assert jnp.allclose(o1, ref1, atol=atol, rtol=rtol), f"{name}: max abs err1 {e1}"
    assert jnp.allclose(o2, ref2, atol=atol, rtol=rtol), f"{name}: max abs err2 {e2}"


if __name__ == "__main__":
    # 1) f32 streams, single-tile fast paths, batched pixel weights.
    _run_case("f32_base", B=2, C=32, H=16, W=16, ratio=16,
              stream_dtype=jnp.float32, w_batched=True, atol=1e-4, rtol=1e-4)
    # 2) f32 streams; exercises partial spatial tiles (HW=480, T=128), the row-tiled
    #    conv with halo DMAs (H=40, Rt=8) and broadcast (batch-1) pixel weights.
    _run_case("f32_tiled", B=2, C=16, H=40, W=12, ratio=4,
              stream_dtype=jnp.float32, w_batched=False,
              hw_tile=128, conv_row_tile=8, atol=1e-4, rtol=1e-4)
    # 3) bf16 streaming I/O (default config): looser tolerance for bf16 output rounding.
    _run_case("bf16_stream", B=2, C=32, H=16, W=16, ratio=16,
              stream_dtype=jnp.bfloat16, w_batched=True, atol=2e-2, rtol=2e-2)
    print("KERNEL_OK")
</pallas_src>

<mosaic_0001>
module attributes {stable_mosaic.version = 11 : i64} {
  func.func @_ca_kernel(%arg0: i32, %arg1: i32, %arg2: memref<1x32x256xf32, #tpu.memory_space<vmem>>, %arg3: memref<1x32x256xf32, #tpu.memory_space<vmem>>, %arg4: memref<1x1x256xf32, #tpu.memory_space<vmem>>, %arg5: memref<1x1x256xf32, #tpu.memory_space<vmem>>, %arg6: memref<2x64xf32, #tpu.memory_space<vmem>>, %arg7: memref<32x2xf32, #tpu.memory_space<vmem>>, %arg8: memref<1x32x2xf32, #tpu.memory_space<vmem>>, %arg9: memref<32x1xf32, #tpu.memory_space<vmem>>, %arg10: memref<32x1xf32, #tpu.memory_space<vmem>>, %arg11: memref<32x1xf32, #tpu.memory_space<vmem>>, %arg12: memref<32x1xf32, #tpu.memory_space<vmem>>) attributes {dimension_semantics = [#tpu.dimension_semantics<parallel>, #tpu.dimension_semantics<arbitrary>], iteration_bounds = array<i64: 2, 1>, scalar_prefetch = 0 : i64, scratch_operands = 4 : i64, tpu.core_type = #tpu.core_type<tc>, window_params = [{transform_indices = @transform_0, window_bounds = array<i64: 1, 32, 256>}, {transform_indices = @transform_1, window_bounds = array<i64: 1, 32, 256>}, {transform_indices = @transform_2, window_bounds = array<i64: 1, 1, 256>}, {transform_indices = @transform_3, window_bounds = array<i64: 1, 1, 256>}, {pipeline_mode = #tpu.pipeline_mode<synchronous>, transform_indices = @transform_4, window_bounds = array<i64: 2, 64>}, {pipeline_mode = #tpu.pipeline_mode<synchronous>, transform_indices = @transform_5, window_bounds = array<i64: 32, 2>}, {transform_indices = @transform_6, window_bounds = array<i64: 1, 32, 2>}]} {
    %c0_i32 = arith.constant 0 : i32
    %0 = arith.cmpi eq, %arg1, %c0_i32 : i32
    %1 = arith.extui %0 : i1 to i32
    %c0_i32_0 = arith.constant 0 : i32
    %2 = arith.cmpi ne, %1, %c0_i32_0 : i32
    scf.if %2 {
      %cst_33 = arith.constant 0.000000e+00 : f32
      %38 = vector.broadcast %cst_33 : f32 to vector<32x1xf32>
      %c0_34 = arith.constant 0 : index
      %c0_35 = arith.constant 0 : index
      %39 = vector.load %arg9[%c0_34, %c0_35] : memref<32x1xf32, #tpu.memory_space<vmem>>, vector<32x1xf32>
      tpu.vector_store %arg9[%c0_34, %c0_35], %38 {strides = array<i32>} : memref<32x1xf32, #tpu.memory_space<vmem>>, vector<32x1xf32>,
      %cst_36 = arith.constant 0.000000e+00 : f32
      %40 = vector.broadcast %cst_36 : f32 to vector<32x1xf32>
      %c0_37 = arith.constant 0 : index
      %c0_38 = arith.constant 0 : index
      %41 = vector.load %arg10[%c0_37, %c0_38] : memref<32x1xf32, #tpu.memory_space<vmem>>, vector<32x1xf32>
      tpu.vector_store %arg10[%c0_37, %c0_38], %40 {strides = array<i32>} : memref<32x1xf32, #tpu.memory_space<vmem>>, vector<32x1xf32>,
      %cst_39 = arith.constant 0xFF800000 : f32
      %42 = vector.broadcast %cst_39 : f32 to vector<32x1xf32>
      %c0_40 = arith.constant 0 : index
      %c0_41 = arith.constant 0 : index
      %43 = vector.load %arg11[%c0_40, %c0_41] : memref<32x1xf32, #tpu.memory_space<vmem>>, vector<32x1xf32>
      tpu.vector_store %arg11[%c0_40, %c0_41], %42 {strides = array<i32>} : memref<32x1xf32, #tpu.memory_space<vmem>>, vector<32x1xf32>,
      %cst_42 = arith.constant 0xFF800000 : f32
      %44 = vector.broadcast %cst_42 : f32 to vector<32x1xf32>
      %c0_43 = arith.constant 0 : index
      %c0_44 = arith.constant 0 : index
      %45 = vector.load %arg12[%c0_43, %c0_44] : memref<32x1xf32, #tpu.memory_space<vmem>>, vector<32x1xf32>
      tpu.vector_store %arg12[%c0_43, %c0_44], %44 {strides = array<i32>} : memref<32x1xf32, #tpu.memory_space<vmem>>, vector<32x1xf32>,
    } else {
    }
    %c0 = arith.constant 0 : index
    %c0_1 = arith.constant 0 : index
    %c0_2 = arith.constant 0 : index
    %3 = vector.load %arg2[%c0, %c0_1, %c0_2] : memref<1x32x256xf32, #tpu.memory_space<vmem>>, vector<1x32x256xf32>
    %4 = vector.shape_cast %3 : vector<1x32x256xf32> to vector<32x256xf32>
    %c0_3 = arith.constant 0 : index
    %c0_4 = arith.constant 0 : index
    %c0_5 = arith.constant 0 : index
    %5 = vector.load %arg4[%c0_3, %c0_4, %c0_5] : memref<1x1x256xf32, #tpu.memory_space<vmem>>, vector<1x1x256xf32>
    %6 = vector.shape_cast %5 : vector<1x1x256xf32> to vector<1x256xf32>
    %7 = vector.broadcast %6 : vector<1x256xf32> to vector<32x256xf32>
    %8 = arith.mulf %4, %7 : vector<32x256xf32>
    %c0_6 = arith.constant 0 : index
    %c0_7 = arith.constant 0 : index
    %c0_8 = arith.constant 0 : index
    %9 = vector.load %arg3[%c0_6, %c0_7, %c0_8] : memref<1x32x256xf32, #tpu.memory_space<vmem>>, vector<1x32x256xf32>
    %10 = vector.shape_cast %9 : vector<1x32x256xf32> to vector<32x256xf32>
    %c0_9 = arith.constant 0 : index
    %c0_10 = arith.constant 0 : index
    %c0_11 = arith.constant 0 : index
    %11 = vector.load %arg5[%c0_9, %c0_10, %c0_11] : memref<1x1x256xf32, #tpu.memory_space<vmem>>, vector<1x1x256xf32>
    %12 = vector.shape_cast %11 : vector<1x1x256xf32> to vector<1x256xf32>
    %13 = vector.broadcast %12 : vector<1x256xf32> to vector<32x256xf32>
    %14 = arith.mulf %10, %13 : vector<32x256xf32>
    %c0_12 = arith.constant 0 : index
    %c0_13 = arith.constant 0 : index
    %15 = vector.load %arg9[%c0_12, %c0_13] : memref<32x1xf32, #tpu.memory_space<vmem>>, vector<32x1xf32>
    %cst = arith.constant dense<0.000000e+00> : vector<32xf32>
    %16 = vector.multi_reduction <add>, %8, %cst [1] : vector<32x256xf32> to vector<32xf32>
    %17 = vector.shape_cast %16 : vector<32xf32> to vector<32x1xf32>
    %18 = arith.addf %15, %17 : vector<32x1xf32>
    %c0_14 = arith.constant 0 : index
    %c0_15 = arith.constant 0 : index
    %19 = vector.load %arg9[%c0_14, %c0_15] : memref<32x1xf32, #tpu.memory_space<vmem>>, vector<32x1xf32>
    tpu.vector_store %arg9[%c0_14, %c0_15], %18 {strides = array<i32>} : memref<32x1xf32, #tpu.memory_space<vmem>>, vector<32x1xf32>,
    %c0_16 = arith.constant 0 : index
    %c0_17 = arith.constant 0 : index
    %20 = vector.load %arg10[%c0_16, %c0_17] : memref<32x1xf32, #tpu.memory_space<vmem>>, vector<32x1xf32>
    %cst_18 = arith.constant dense<0.000000e+00> : vector<32xf32>
    %21 = vector.multi_reduction <add>, %14, %cst_18 [1] : vector<32x256xf32> to vector<32xf32>
    %22 = vector.shape_cast %21 : vector<32xf32> to vector<32x1xf32>
    %23 = arith.addf %20, %22 : vector<32x1xf32>
    %c0_19 = arith.constant 0 : index
    %c0_20 = arith.constant 0 : index
    %24 = vector.load %arg10[%c0_19, %c0_20] : memref<32x1xf32, #tpu.memory_space<vmem>>, vector<32x1xf32>
    tpu.vector_store %arg10[%c0_19, %c0_20], %23 {strides = array<i32>} : memref<32x1xf32, #tpu.memory_space<vmem>>, vector<32x1xf32>,
    %c0_21 = arith.constant 0 : index
    %c0_22 = arith.constant 0 : index
    %25 = vector.load %arg11[%c0_21, %c0_22] : memref<32x1xf32, #tpu.memory_space<vmem>>, vector<32x1xf32>
    %cst_23 = arith.constant dense<0xFF800000> : vector<32xf32>
    %26 = vector.multi_reduction <maximumf>, %8, %cst_23 [1] : vector<32x256xf32> to vector<32xf32>
    %27 = vector.shape_cast %26 : vector<32xf32> to vector<32x1xf32>
    %28 = arith.maximumf %25, %27 : vector<32x1xf32>
    %c0_24 = arith.constant 0 : index
    %c0_25 = arith.constant 0 : index
    %29 = vector.load %arg11[%c0_24, %c0_25] : memref<32x1xf32, #tpu.memory_space<vmem>>, vector<32x1xf32>
    tpu.vector_store %arg11[%c0_24, %c0_25], %28 {strides = array<i32>} : memref<32x1xf32, #tpu.memory_space<vmem>>, vector<32x1xf32>,
    %c0_26 = arith.constant 0 : index
    %c0_27 = arith.constant 0 : index
    %30 = vector.load %arg12[%c0_26, %c0_27] : memref<32x1xf32, #tpu.memory_space<vmem>>, vector<32x1xf32>
    %cst_28 = arith.constant dense<0xFF800000> : vector<32xf32>
    %31 = vector.multi_reduction <maximumf>, %14, %cst_28 [1] : vector<32x256xf32> to vector<32xf32>
    %32 = vector.shape_cast %31 : vector<32xf32> to vector<32x1xf32>
    %33 = arith.maximumf %30, %32 : vector<32x1xf32>
    %c0_29 = arith.constant 0 : index
    %c0_30 = arith.constant 0 : index
    %34 = vector.load %arg12[%c0_29, %c0_30] : memref<32x1xf32, #tpu.memory_space<vmem>>, vector<32x1xf32>
    tpu.vector_store %arg12[%c0_29, %c0_30], %33 {strides = array<i32>} : memref<32x1xf32, #tpu.memory_space<vmem>>, vector<32x1xf32>,
    %c0_i32_31 = arith.constant 0 : i32
    %35 = arith.cmpi eq, %arg1, %c0_i32_31 : i32
    %36 = arith.extui %35 : i1 to i32
    %c0_i32_32 = arith.constant 0 : i32
    %37 = arith.cmpi ne, %36, %c0_i32_32 : i32
    scf.if %37 {
      %c0_33 = arith.constant 0 : index
      %c0_34 = arith.constant 0 : index
      %38 = vector.load %arg9[%c0_33, %c0_34] : memref<32x1xf32, #tpu.memory_space<vmem>>, vector<32x1xf32>
      %cst_35 = arith.constant 3.906250e-03 : f32
      %39 = vector.broadcast %cst_35 : f32 to vector<32x1xf32>
      %40 = arith.mulf %38, %39 : vector<32x1xf32>
      %c0_36 = arith.constant 0 : index
      %c0_37 = arith.constant 0 : index
      %41 = vector.load %arg10[%c0_36, %c0_37] : memref<32x1xf32, #tpu.memory_space<vmem>>, vector<32x1xf32>
      %cst_38 = arith.constant 3.906250e-03 : f32
      %42 = vector.broadcast %cst_38 : f32 to vector<32x1xf32>
      %43 = arith.mulf %41, %42 : vector<32x1xf32>
      %c0_39 = arith.constant 0 : index
      %c0_40 = arith.constant 0 : index
      %44 = vector.load %arg11[%c0_39, %c0_40] : memref<32x1xf32, #tpu.memory_space<vmem>>, vector<32x1xf32>
      %c0_41 = arith.constant 0 : index
      %c0_42 = arith.constant 0 : index
      %45 = vector.load %arg12[%c0_41, %c0_42] : memref<32x1xf32, #tpu.memory_space<vmem>>, vector<32x1xf32>
      %46 = tpu.concatenate %40, %44, %43, %45 in 1 : vector<32x1xf32>, vector<32x1xf32>, vector<32x1xf32>, vector<32x1xf32> -> vector<32x4xf32>
      %47 = tpu.concatenate %43, %45, %40, %44 in 1 : vector<32x1xf32>, vector<32x1xf32>, vector<32x1xf32>, vector<32x1xf32> -> vector<32x4xf32>
      %48 = tpu.concatenate %46, %47 in 0 : vector<32x4xf32>, vector<32x4xf32> -> vector<64x4xf32>
      %c0_43 = arith.constant 0 : index
      %c0_44 = arith.constant 0 : index
      %49 = vector.load %arg6[%c0_43, %c0_44] : memref<2x64xf32, #tpu.memory_space<vmem>>, vector<2x64xf32>
      %cst_45 = arith.constant dense<0.000000e+00> : vector<2x4xf32>
      %50 = tpu.matmul %49, %48, %cst_45 {dimension_numbers = #tpu.dot_dimension_numbers<[1], [0], [0], [1], [0, 0, 1, 1], [], []>} : vector<2x64xf32>, vector<64x4xf32>, vector<2x4xf32> -> vector<2x4xf32>
      %cst_46 = arith.constant 0.000000e+00 : f32
      %51 = vector.broadcast %cst_46 : f32 to vector<2x4xf32>
      %52 = arith.maximumf %50, %51 : vector<2x4xf32>
      %c0_47 = arith.constant 0 : index
      %c0_48 = arith.constant 0 : index
      %53 = vector.load %arg7[%c0_47, %c0_48] : memref<32x2xf32, #tpu.memory_space<vmem>>, vector<32x2xf32>
      %cst_49 = arith.constant dense<0.000000e+00> : vector<32x4xf32>
      %54 = tpu.matmul %53, %52, %cst_49 {dimension_numbers = #tpu.dot_dimension_numbers<[1], [0], [0], [1], [0, 0, 1, 1], [], []>} : vector<32x2xf32>, vector<2x4xf32>, vector<32x4xf32> -> vector<32x4xf32>
      %55 = vector.extract_strided_slice %54 {offsets = [0, 0], sizes = [32, 1], strides = [1, 1]} : vector<32x4xf32> to vector<32x1xf32>
      %56 = vector.extract_strided_slice %54 {offsets = [0, 1], sizes = [32, 1], strides = [1, 1]} : vector<32x4xf32> to vector<32x1xf32>
      %57 = arith.addf %55, %56 : vector<32x1xf32>
      %58 = arith.negf %57 : vector<32x1xf32>
      %59 = math.exp %58 : vector<32x1xf32>
      %cst_50 = arith.constant 1.000000e+00 : f32
      %60 = vector.broadcast %cst_50 : f32 to vector<32x1xf32>
      %61 = arith.addf %60, %59 : vector<32x1xf32>
      %62 = arith.divf %60, %61 : vector<32x1xf32>
      %63 = vector.extract_strided_slice %54 {offsets = [0, 2], sizes = [32, 1], strides = [1, 1]} : vector<32x4xf32> to vector<32x1xf32>
      %64 = vector.extract_strided_slice %54 {offsets = [0, 3], sizes = [32, 1], strides = [1, 1]} : vector<32x4xf32> to vector<32x1xf32>
      %65 = arith.addf %63, %64 : vector<32x1xf32>
      %66 = arith.negf %65 : vector<32x1xf32>
      %67 = math.exp %66 : vector<32x1xf32>
      %cst_51 = arith.constant 1.000000e+00 : f32
      %68 = vector.broadcast %cst_51 : f32 to vector<32x1xf32>
      %69 = arith.addf %68, %67 : vector<32x1xf32>
      %70 = arith.divf %68, %69 : vector<32x1xf32>
      %71 = tpu.concatenate %62, %70 in 1 : vector<32x1xf32>, vector<32x1xf32> -> vector<32x2xf32>
      %c0_52 = arith.constant 0 : index
      %c0_53 = arith.constant 0 : index
      %c0_54 = arith.constant 0 : index
      %72 = vector.load %arg8[%c0_52, %c0_53, %c0_54] : memref<1x32x2xf32, #tpu.memory_space<vmem>>, vector<1x32x2xf32>
      %73 = vector.shape_cast %72 : vector<1x32x2xf32> to vector<32x2xf32>
      %74 = vector.shape_cast %71 : vector<32x2xf32> to vector<1x32x2xf32>
      tpu.vector_store %arg8[%c0_52, %c0_53, %c0_54], %74 {strides = array<i32>} : memref<1x32x2xf32, #tpu.memory_space<vmem>>, vector<1x32x2xf32>,
    } else {
    }
    return
  }
  func.func @transform_0(%arg0: i32, %arg1: i32) -> (i32, i32, i32) {
    %c0_i32 = arith.constant 0 : i32
    %c0_i32_0 = arith.constant 0 : i32
    return %arg0, %c0_i32, %arg1 : i32, i32, i32
  }
  func.func @transform_1(%arg0: i32, %arg1: i32) -> (i32, i32, i32) {
    %c0_i32 = arith.constant 0 : i32
    %c0_i32_0 = arith.constant 0 : i32
    return %arg0, %c0_i32, %arg1 : i32, i32, i32
  }
  func.func @transform_2(%arg0: i32, %arg1: i32) -> (i32, i32, i32) {
    %c0_i32 = arith.constant 0 : i32
    %c0_i32_0 = arith.constant 0 : i32
    return %arg0, %c0_i32, %arg1 : i32, i32, i32
  }
  func.func @transform_3(%arg0: i32, %arg1: i32) -> (i32, i32, i32) {
    %c0_i32 = arith.constant 0 : i32
    %c0_i32_0 = arith.constant 0 : i32
    return %arg0, %c0_i32, %arg1 : i32, i32, i32
  }
  func.func @transform_4(%arg0: i32, %arg1: i32) -> (i32, i32) {
    %c0_i32 = arith.constant 0 : i32
    %c0_i32_0 = arith.constant 0 : i32
    %c0_i32_1 = arith.constant 0 : i32
    return %c0_i32, %c0_i32_0 : i32, i32
  }
  func.func @transform_5(%arg0: i32, %arg1: i32) -> (i32, i32) {
    %c0_i32 = arith.constant 0 : i32
    %c0_i32_0 = arith.constant 0 : i32
    %c0_i32_1 = arith.constant 0 : i32
    return %c0_i32, %c0_i32_0 : i32, i32
  }
  func.func @transform_6(%arg0: i32, %arg1: i32) -> (i32, i32, i32) {
    %c0_i32 = arith.constant 0 : i32
    %c0_i32_0 = arith.constant 0 : i32
    %c0_i32_1 = arith.constant 0 : i32
    return %arg0, %c0_i32, %c0_i32_0 : i32, i32, i32
  }
}

</mosaic_0001>

<bundles_post_ra>
// kernel: tpu_custom_call.1
= control target key start
LH: loop header
LB: loop body
LE: loop exit
PB: predicated region body
PF: predicated region fallthrough
CT: control target
= control target key end

     0   :  { %11 = vsyncpa [#allocation7], 0  ;;  %s1838_s0 = inlined_call_operand.hbm [shape: f32[2,32,256], index: 0, kind: input, shape index: {}]   ;;  %s1839_s1 = inlined_call_operand.hbm [shape: f32[2,32,256], index: 1, kind: input, shape index: {}]   ;;  %s1840_s2 = inlined_call_operand.vmem [shape: f32[2,1,256], index: 2, kind: input, shape index: {}]   ;;  %s1841_s3 = inlined_call_operand.vmem [shape: f32[2,1,256], index: 3, kind: input, shape index: {}]   ;;  %s1842_s4 = inlined_call_operand.vmem [shape: f32[2,64], index: 4, kind: input, shape index: {}]   ;;  %s1843_s5 = inlined_call_operand.vmem [shape: f32[32,2], index: 5, kind: input, shape index: {}]   ;;  %s1844_s6 = inlined_call_operand.vmem [shape: f32[2,32,2], index: 6, kind: output, shape index: {}]  }
   0x1   :  { %13 = vsyncpa [#allocation7 + $0x1], 0 }
   0x2   :  { %14 = vsyncpa [#allocation9], 0 }
   0x3   :  { %16 = vsyncpa [#allocation9 + $0x1], 0  ;;  %s1492_s21 = smov 0   ;;  %s1494_s22 = smov 0  }
   0x4   :  { %s1496_s23 = smov 0   ;;  %s1498_s24 = smov 0  }
   0x5   :  { %s1500_s25 = smov 0   ;;  %s1502_s26 = smov 0  }
   0x6 LB: > { %s1098_s27 = sadd.s32 4294967295, %s1443_s26   ;;  %s34_s28 = sadd.s32 1, %s1439_s25  ;;  %s1443_s26 = sphi %s1502_s26, %s22_s26   ;;  %s1439_s25 = sphi %s1500_s25, %s1855_s25   ;;  %s1435_s24 = sphi %s1498_s24, %s1854_s24   ;;  %s1431_s23 = sphi %s1496_s23, %s1853_s23   ;;  %s1427_s22 = sphi %s1494_s22, %s1852_s22   ;;  %s1423_s21 = sphi %s1492_s21, %s1851_s21  }
   0x7   : > { %p36_p0 = scmp.ge.s32.totalorder %s34_s28, 2  ;;  %s43_s29 = sadd.s32 1, %s1431_s23 }
   0x8   : > { %p50_p1 = scmp.ne.s32.totalorder %s1431_s23, %s1427_s22  ;;  %p51_p2 = scmp.eq.s32.totalorder %s1443_s26, 0 }
   0x9   : > { %s1857_s28 = smov (%p36_p0, %s34_s28), 0  ;;  %p56_p4 = scmp.ne.s32.totalorder %s1427_s22, %s1423_s21 }
   0xa   : > { %p1528_p3 = por %p51_p2, %p50_p1  ;;  %s38_s7 = ssub.s32 %s1439_s25, %s1857_s28 }
   0xb   : > { %p57_p5 = scmp.eq.s32.totalorder %s1098_s27, 0  ;;  %p41_p6 = scmp.eq.s32.totalorder %s38_s7, 0 }
   0xc   : > { %p1194_p8 = scmp.lt.s32.totalorder %s1443_s26, 2  ;;  %s1544_s10 = sand.u32 1, %s1431_s23  }
   0xd   : > { %p1535_p7 = por %p57_p5, %p56_p4  ;;  %s1127_s11 = sshll.u32 %s1439_s25, 10 }
   0xe   : > { %s1541_s9 = scalar_select %p41_p6, %s1431_s23, %s43_s29  }
   0xf   : > { %s1847_s8 = scalar_select %p1535_p7, 1, 0 }
  0x10   : > { %s1102_s12 = sshll.u32 %s1544_s10, 6  ;;  %s1553_s15 = scalar_lea.hbm %s1838_s0, %s1127_s11 }
  0x11   : > { %s242_s16 = scalar_lea.vmem [#allocation6], %s1102_s12  ;;  %p1559_p9 = pnand %p1194_p8, %p1528_p3 }
  0x12   : > { %s251_s17 = sshll.u32 %s242_s16, 4  ;;  %s239_s19 = scalar_lea.sflag [#allocation7], %s1544_s10  ;;  %s1563_s17 = int_to_ptr.vmem [resolvable:$true] %s251_s17 }
  0x13   : > { %s1329_s20 = scalar_lea.hbm %s1553_s15, 1024  ;;  %p1331_p11 = pneg %p1559_p9 }
  0x14   : > { %p1330_p10 = scmp.ne.s32.totalorder %s1553_s15, %s1329_s20  ;;  %s1334_s29 = scalar_lea.hbm %s1838_s0, 2048 }
  0x15   : > { %p1335_p0 = scmp.lt.u32.totalorder %s1553_s15, %s1838_s0  ;;  %p1336_p1 = scmp.lt.u32.totalorder %s1334_s29, %s1329_s20 }
  0x16   : > { %p1332_p12 = pnand %p1331_p11, %p1330_p10  ;;  %p1338_p3 = scmp.lt.u32.totalorder %s1329_s20, %s1553_s15 }
  0x17   : > { %p1337_p2 = por %p1336_p1, %p1335_p0 }
  0x18   : > { %p1333_p13 = pneg %p1332_p12 }
  0x19   : > { %p1339_p4 = por %p1338_p3, %p1337_p2 }
  0x1b   : > { %p1340_p5 = pnand %p1339_p4, %p1333_p13 }
  0x1d   : > { %1343 = shalt.err (!%p1340_p5)
}
  0x1e   : > { %s1344_s13 = scalar_lea.vmem %s1563_s17, 1024  ;;  %s1445_s14 = smov [#allocation6]  }
  0x1f   : > { %p1345_p6 = scmp.ne.s32.totalorder %s1563_s17, %s1344_s13  ;;  %s1349_s16 = sshll.u32 %s1445_s14, 4  ;;  %s1350_s16 = int_to_ptr.vmem [resolvable:$false] %s1349_s16 }
  0x20   : > { %s1351_s21 = scalar_lea.vmem %s1350_s16, 2048  ;;  %p1352_p12 = scmp.lt.s32.totalorder %s1563_s17, %s1350_s16 }
  0x21   : > { %p1347_p8 = pnand %p1345_p6, %p1331_p11  ;;  %p1353_p0 = scmp.lt.s32.totalorder %s1351_s21, %s1344_s13 }
  0x23   : > { %p1348_p10 = pneg %p1347_p8  ;;  %p1354_p1 = por %p1353_p0, %p1352_p12 }
  0x25   : > { %p1355_p2 = pnand %p1354_p1, %p1348_p10 }
  0x27   : > { %1358 = shalt.err (!%p1355_p2)
}
  0x28   : > { %s1446_s20 = smov 256   ;;  %s1447_s27 = smov 16  }
  0x29   : > { %1190 = dma.hbm_to_vmem [thread:$0]  (!%p1559_p9), %s1553_s15, 1024, %s1563_s17, %s239_s19, %s1446_s20, %s1446_s20, %s1447_s27  }
  0x2a   : > { %p1108_p13 = scmp.ge.s32.totalorder %s1443_s26, 1  ;;  %p306_p3 = scmp.lt.s32.totalorder %s1443_s26, 3 }
  0x2b   : > { %s1607_s13 = scalar_lea.hbm %s1839_s1, %s1127_s11  ;;  %s265_s14 = scalar_lea.vmem [#allocation8], %s1102_s12 }
  0x2c   : > { %p1598_p4 = pnand %p1108_p13, %p306_p3  ;;  %s274_s16 = sshll.u32 %s265_s14, 4  ;;  %s1611_s16 = int_to_ptr.vmem [resolvable:$true] %s274_s16 }
  0x2d   : > { %s262_s15 = scalar_lea.sflag [#allocation9], %s1544_s10  ;;  %s1359_s17 = scalar_lea.hbm %s1607_s13, 1024 }
  0x2e   : > { %p1360_p5 = scmp.ne.s32.totalorder %s1607_s13, %s1359_s17  ;;  %s1364_s11 = scalar_lea.hbm %s1839_s1, 2048 }
  0x2f   : > { %p1365_p10 = scmp.lt.u32.totalorder %s1607_s13, %s1839_s1  ;;  %p1366_p12 = scmp.lt.u32.totalorder %s1364_s11, %s1359_s17 }
  0x30   : > { %p1362_p6 = pnand %p1360_p5, %p1331_p11  ;;  %p1368_p1 = scmp.lt.u32.totalorder %s1359_s17, %s1607_s13 }
  0x31   : > { %p1367_p0 = por %p1366_p12, %p1365_p10 }
  0x32   : > { %p1363_p8 = pneg %p1362_p6 }
  0x33   : > { %p1369_p2 = por %p1368_p1, %p1367_p0 }
  0x35   : > { %p1370_p13 = pnand %p1369_p2, %p1363_p8 }
  0x37   : > { %1373 = shalt.err (!%p1370_p13)
}
  0x38   : > { %s1374_s12 = scalar_lea.vmem %s1611_s16, 1024  ;;  %s1448_s14 = smov [#allocation8]  }
  0x39   : > { %p1375_p3 = scmp.ne.s32.totalorder %s1611_s16, %s1374_s12  ;;  %s1379_s19 = sshll.u32 %s1448_s14, 4  ;;  %s1380_s19 = int_to_ptr.vmem [resolvable:$false] %s1379_s19 }
  0x3a   : > { %s1381_s21 = scalar_lea.vmem %s1380_s19, 2048  ;;  %p1382_p7 = scmp.lt.s32.totalorder %s1611_s16, %s1380_s19 }
  0x3b   : > { %p1377_p5 = pnand %p1375_p3, %p1331_p11  ;;  %p1383_p10 = scmp.lt.s32.totalorder %s1381_s21, %s1374_s12 }
  0x3d   : > { %p1378_p6 = pneg %p1377_p5  ;;  %p1384_p12 = por %p1383_p10, %p1382_p7 }
  0x3f   : > { %p1385_p0 = pnand %p1384_p12, %p1378_p6 }
  0x41   : > { %1388 = shalt.err (!%p1385_p0)
}
  0x42   : > { %1193 = dma.hbm_to_vmem [thread:$0]  (!%p1559_p9), %s1607_s13, 1024, %s1611_s16, %s262_s15, %s1446_s20, %s1446_s20, %s1447_s27  }
  0x43   : > { %310 = sbr.rel (%p1598_p4) target bundleno = 1096 (0x448), region = 44  ;;  %s312_s17 = sand.u32 (!%p1598_p4), 1, %s1427_s22  }
  0x44   : > { %s1109_s11 = sshll.u32 (!%p1598_p4), %s312_s17, 6  ;;  %s313_s30 = scalar_lea.sflag (!%p1598_p4), [#allocation7], %s312_s17 }
  0x45   : > { %s1645_s7 = scalar_lea.vmem (!%p1598_p4), [#allocation6], %s1109_s11  ;;  %p1850_p7 = scmp.ne.s32.totalorder (!%p1598_p4), %s1847_s8, 0 }
  0x4a   : > { %1414 = dma.done.wait (%p1850_p7), %s313_s30, 1024  }
  0x4b   : > { %1416 = vsyncadd (%p1850_p7), %s313_s30, 4294966272  ;;  %s322_s10 = scalar_lea.sflag [#allocation9], %s312_s17  ;;  %s1651_s18 = scalar_lea.vmem [#allocation8], %s1109_s11 }
  0x4c   : > { %1418 = dma.done.wait (%p1850_p7), %s322_s10, 1024  }
  0x4d   : > { %1420 = vsyncadd (%p1850_p7), %s322_s10, 4294966272  ;;  %p378_p9 = scmp.lt.s32.totalorder %s1435_s24, 1  ;;  %v431_v0 = vlaneseq  ;;  %vm404_vm0 = vcmask 7168   ;;  %v1449_v1 = vmov 0.0   ;;  %v449_v5 = vld [vmem:[%s1651_s18] sm:$0xff]  ;;  %v450_v6 = vld [vmem:[%s1651_s18 + $0x8] sm:$0xff] }
  0x4e   : > { %409 = vst.msk [vmem:[#allocation3] sm:$0xff] %vm404_vm0, %v1449_v1  ;;  %405 = vst.msk [vmem:[#allocation2] sm:$0xff] %vm404_vm0, %v1449_v1  ;;  %v421_v10 = vld [vmem:[%s1645_s7] sm:$0xff]  ;;  %v422_v11 = vld [vmem:[%s1645_s7 + $0x8] sm:$0xff]  ;;  %v1450_v45 = vmov -inf   ;;  %s1451_s12 = smov 1  }
  0x4f   : > { %406 = vst.msk [vmem:[#allocation2 + $0x8] sm:$0xff] %vm404_vm0, %v1449_v1  ;;  %407 = vst.msk [vmem:[#allocation2 + $0x10] sm:$0xff] %vm404_vm0, %v1449_v1  ;;  %s1859_s24 = smov (!%p378_p9, %s1435_s24), 1  ;;  %v432_v2 = vshrl.u32 %v431_v0, 7  ;;  %v451_v15 = vld [vmem:[%s1651_s18 + $0x10] sm:$0xff]  ;;  %v452_v16 = vld [vmem:[%s1651_s18 + $0x18] sm:$0xff] }
  0x50   : > { %408 = vst.msk [vmem:[#allocation2 + $0x18] sm:$0xff] %vm404_vm0, %v1449_v1  ;;  %410 = vst.msk [vmem:[#allocation3 + $0x8] sm:$0xff] %vm404_vm0, %v1449_v1  ;;  %s1111_s8 = sshll.u32 %s1859_s24, 1  ;;  %v423_v17 = vld [vmem:[%s1645_s7 + $0x10] sm:$0xff]  ;;  %v424_v22 = vld [vmem:[%s1645_s7 + $0x18] sm:$0xff]  ;;  %s1452_s14 = smov 3  }
  0x51   : > { %411 = vst.msk [vmem:[#allocation3 + $0x10] sm:$0xff] %vm404_vm0, %v1449_v1  ;;  %412 = vst.msk [vmem:[#allocation3 + $0x18] sm:$0xff] %vm404_vm0, %v1449_v1  ;;  %v433_v3 = vsub.s32 0, %v432_v2  ;;  %v437_v4 = vsub.s32 1, %v432_v2  ;;  %s393_s29 = scalar_lea.vmem %s1841_s3, %s1111_s8  ;;  %s384_s15 = scalar_lea.vmem %s1840_s2, %s1111_s8  ;;  %v453_v31 = vld [vmem:[%s1651_s18 + $0x20] sm:$0xff]  ;;  %v454_v32 = vld [vmem:[%s1651_s18 + $0x28] sm:$0xff] }
  0x52   : > { %v457_v7 = vld [vmem:[%s393_s29] sm:$0x3]  ;;  %v455_v33 = vld [vmem:[%s1651_s18 + $0x30] sm:$0xff]  ;;  %v456_v34 = vld [vmem:[%s1651_s18 + $0x38] sm:$0xff]  ;;  %413 = vst.msk [vmem:[#allocation4] sm:$0xff] %vm404_vm0, %v1450_v45  ;;  %s1454_s19 = smov 2  }
  0x53   : > { %v462_v8 = vrot.slane %v457_v7, %v433_v3  ;;  %v466_v9 = vrot.slane %v457_v7, %v437_v4  ;;  %v429_v12 = vld [vmem:[%s384_s15] sm:$0x3]  ;;  %v426_v42 = vld [vmem:[%s1645_s7 + $0x28] sm:$0xff]  ;;  %v427_v43 = vld [vmem:[%s1645_s7 + $0x30] sm:$0xff]  ;;  %414 = vst.msk [vmem:[#allocation4 + $0x8] sm:$0xff] %vm404_vm0, %v1450_v45  ;;  %vm1455_vm1 = vmmov 0  }
  0x54   : > { %v434_v13 = vrot.slane %v429_v12, %v433_v3  ;;  %v438_v14 = vrot.slane %v429_v12, %v437_v4  ;;  %v425_v41 = vld [vmem:[%s1645_s7 + $0x20] sm:$0xff]  ;;  %v428_v44 = vld [vmem:[%s1645_s7 + $0x38] sm:$0xff]  ;;  %415 = vst.msk [vmem:[#allocation4 + $0x10] sm:$0xff] %vm404_vm0, %v1450_v45  ;;  %416 = vst.msk [vmem:[#allocation4 + $0x18] sm:$0xff] %vm404_vm0, %v1450_v45  ;;  %1160 = vmatprep.mubr.msk.f32.mxu0 %vm1455_vm1, %v1449_v1  ;;  %vm653_vm2 = vcmask 15360   ;;  %vm658_vm3 = vcmask 23552  }
  0x55   : > { %v469_v18 = vmul.f32 %v462_v8, %v449_v5  ;;  %v470_v19 = vmul.f32 %v466_v9, %v450_v6  ;;  %v471_v20 = vmul.f32 %v462_v8, %v451_v15  ;;  %v472_v21 = vmul.f32 %v466_v9, %v452_v16  ;;  %417 = vst.msk [vmem:[#allocation5] sm:$0xff] %vm404_vm0, %v1450_v45  ;;  %v502_v60 = vld [vmem:[#allocation3] sm:$0xff]  ;;  %s1456_s29 = smov 127   ;;  %s1129_s13 = sshll.u32 %s1859_s24, 5 }
  0x56   : > { %v441_v23 = vmul.f32 %v434_v13, %v421_v10  ;;  %v442_v24 = vmul.f32 %v438_v14, %v422_v11  ;;  %v443_v25 = vmul.f32 %v434_v13, %v423_v17  ;;  %v444_v26 = vmul.f32 %v438_v14, %v424_v22  ;;  %418 = vst.msk [vmem:[#allocation5 + $0x8] sm:$0xff] %vm404_vm0, %v1450_v45 }
  0x57   : > { %v506_v27 = vadd.f32 %v470_v19, %v469_v18  ;;  %v509_v29 = vadd.f32 %v472_v21, %v471_v20  ;;  %v554_v35 = vmax.f32 %v469_v18, %v470_v19  ;;  %v473_v36 = vmul.f32 %v462_v8, %v453_v31  ;;  %419 = vst.msk [vmem:[#allocation5 + $0x10] sm:$0xff] %vm404_vm0, %v1450_v45  ;;  %v503_v3 = vld [vmem:[#allocation3 + $0x8] sm:$0xff] }
  0x58   : > { %v530_v28 = vmax.f32 %v441_v23, %v442_v24  ;;  %v533_v30 = vmax.f32 %v443_v25, %v444_v26  ;;  %v474_v37 = vmul.f32 %v466_v9, %v454_v32  ;;  %v557_v38 = vmax.f32 %v471_v20, %v472_v21  ;;  %420 = vst.msk [vmem:[#allocation5 + $0x18] sm:$0xff] %vm404_vm0, %v1450_v45  ;;  %v504_v15 = vld [vmem:[#allocation3 + $0x10] sm:$0xff]  ;;  %v505_v16 = vld [vmem:[#allocation3 + $0x18] sm:$0xff] }
  0x59   : > { %507 = vadd.xlane.f32.xlu0 %v506_v27  ;;  %v475_v39 = vmul.f32 %v462_v8, %v455_v33  ;;  %v476_v40 = vmul.f32 %v466_v9, %v456_v34  ;;  %v445_v47 = vmul.f32 %v434_v13, %v425_v41  ;;  %v446_v48 = vmul.f32 %v438_v14, %v426_v42  ;;  %v526_v61 = vld [vmem:[#allocation4] sm:$0xff]  ;;  %v478_v41 = vld [vmem:[#allocation2 + $0x8] sm:$0xff] }
  0x5a   : > { %531 = vmax.xlane.f32.xlu1 %v530_v28  ;;  %v512_v46 = vadd.f32 %v474_v37, %v473_v36  ;;  %v447_v50 = vmul.f32 %v434_v13, %v427_v43  ;;  %v448_v51 = vmul.f32 %v438_v14, %v428_v44  ;;  %v560_v54 = vmax.f32 %v473_v36, %v474_v37  ;;  %v527_v4 = vld [vmem:[#allocation4 + $0x8] sm:$0xff] }
  0x5b   : > { %v515_v49 = vadd.f32 %v476_v40, %v475_v39  ;;  %v536_v52 = vmax.f32 %v445_v47, %v446_v48  ;;  %v563_v55 = vmax.f32 %v475_v39, %v476_v40  ;;  %v481_v56 = vadd.f32 %v442_v24, %v441_v23  ;;  %v528_v21 = vld [vmem:[#allocation4 + $0x10] sm:$0xff]  ;;  %v529_v22 = vld [vmem:[#allocation4 + $0x18] sm:$0xff]  ;;  %v477_v39 = vld [vmem:[#allocation2] sm:$0xff] }
  0x5c   : > { %v539_v53 = vmax.f32 %v447_v50, %v448_v51  ;;  %v484_v57 = vadd.f32 %v444_v26, %v443_v25  ;;  %v487_v58 = vadd.f32 %v446_v48, %v445_v47  ;;  %v490_v59 = vadd.f32 %v448_v51, %v447_v50  ;;  %v550_v9 = vld [vmem:[#allocation5] sm:$0xff] }
  0x5d   : > { %510 = vadd.xlane.f32.xlu0 %v509_v29  ;;  %v551_v10 = vld [vmem:[#allocation5 + $0x8] sm:$0xff]  ;;  %vm716_vm4 = vcmask 523264   ;;  %vm807_vm5 = vcmask 1041408  }
  0x5e   : > { %534 = vmax.xlane.f32.xlu1 %v533_v30  ;;  %v552_v31 = vld [vmem:[#allocation5 + $0x10] sm:$0xff] }
  0x5f   : > { %v553_v33 = vld [vmem:[#allocation5 + $0x18] sm:$0xff] }
  0x61   : > { %555 = vmax.xlane.f32.xlu0 %v554_v35 }
  0x62   : > { %558 = vmax.xlane.f32.xlu1 %v557_v38 }
  0x65   : > { %513 = vadd.xlane.f32.xlu0 %v512_v46 }
  0x66   : > { %516 = vadd.xlane.f32.xlu1 %v515_v49 }
  0x69   : > { %537 = vmax.xlane.f32.xlu0 %v536_v52  ;;  %v479_v52 = vld [vmem:[#allocation2 + $0x10] sm:$0xff] }
  0x6a   : > { %540 = vmax.xlane.f32.xlu1 %v539_v53  ;;  %v1453_v53 = vmov 0.0|0.0  }
  0x6b   : > { %1171 = vmatprep.subr.bf16.mxu0 %v1453_v53 }
  0x6d   : > { %561 = vmax.xlane.f32.xlu0 %v560_v54 }
  0x6e   : > { %564 = vmax.xlane.f32.xlu1 %v563_v55  ;;  %v480_v55 = vld [vmem:[#allocation2 + $0x18] sm:$0xff] }
  0x71   : > { %482 = vadd.xlane.f32.xlu0 %v481_v56 }
  0x72   : > { %485 = vadd.xlane.f32.xlu1 %v484_v57 }
  0x75   : > { %488 = vadd.xlane.f32.xlu0 %v487_v58 }
  0x76   : > { %491 = vadd.xlane.f32.xlu1 %v490_v59 }
  0xe6   : > { %v508_v62 = vpop.xlane.xlu0 %507 }
  0xe7   : > { %v518_v63 = vadd.f32 %v508_v62, %v502_v60  ;;  %v532_v0 = vpop.xlane.xlu1 %531 }
  0xe8   : > { %v542_v2 = vmax.f32 %v526_v61, %v532_v0 }
  0xe9   : > { %522 = vst.msk [vmem:[#allocation3] sm:$0xff] %vm404_vm0, %v518_v63 }
  0xea   : > { %546 = vst.msk [vmem:[#allocation4] sm:$0xff] %vm404_vm0, %v542_v2  ;;  %v511_v5 = vpop.xlane.xlu0 %510 }
  0xeb   : > { %v519_v6 = vadd.f32 %v511_v5, %v503_v3  ;;  %v535_v7 = vpop.xlane.xlu1 %534 }
  0xec   : > { %v543_v8 = vmax.f32 %v527_v4, %v535_v7 }
  0xed   : > { %523 = vst.msk [vmem:[#allocation3 + $0x8] sm:$0xff] %vm404_vm0, %v519_v6 }
  0xee   : > { %547 = vst.msk [vmem:[#allocation4 + $0x8] sm:$0xff] %vm404_vm0, %v543_v8  ;;  %v556_v11 = vpop.xlane.xlu0 %555 }
  0xef   : > { %v566_v12 = vmax.f32 %v550_v9, %v556_v11  ;;  %v559_v13 = vpop.xlane.xlu1 %558 }
  0xf0   : > { %v567_v14 = vmax.f32 %v551_v10, %v559_v13  ;;  %v585_v56 = vld [vmem:[#allocation3] sm:$0xff] }
  0xf1   : > { %570 = vst.msk [vmem:[#allocation5] sm:$0xff] %vm404_vm0, %v566_v12  ;;  %v593_v23 = vld [vmem:[#allocation4] sm:$0xff]  ;;  %v1736_v63 = vmul.f32 0.00390625, %v585_v56 }
  0xf2   : > { %571 = vst.msk [vmem:[#allocation5 + $0x8] sm:$0xff] %vm404_vm0, %v567_v14  ;;  %v514_v17 = vpop.xlane.xlu0 %513 }
  0xf3   : > { %v520_v18 = vadd.f32 %v514_v17, %v504_v15  ;;  %v517_v19 = vpop.xlane.xlu1 %516 }
  0xf4   : > { %v521_v20 = vadd.f32 %v517_v19, %v505_v16  ;;  %v586_v48 = vld [vmem:[#allocation3 + $0x8] sm:$0xff] }
  0xf5   : > { %524 = vst.msk [vmem:[#allocation3 + $0x10] sm:$0xff] %vm404_vm0, %v520_v18  ;;  %v594_v24 = vld [vmem:[#allocation4 + $0x8] sm:$0xff]  ;;  %v1733_v59 = vmul.f32 0.00390625, %v586_v48 }
  0xf6   : > { %525 = vst.msk [vmem:[#allocation3 + $0x18] sm:$0xff] %vm404_vm0, %v521_v20  ;;  %v538_v25 = vpop.xlane.xlu0 %537  ;;  %v1253_v26 = vpack.i.bf16 %v594_v24, %v593_v23 }
  0xf7   : > { %v544_v27 = vmax.f32 %v528_v21, %v538_v25  ;;  %v541_v28 = vpop.xlane.xlu1 %540  ;;  %v1268_v0 = vpack.i.bf16 %v1733_v59, %v1736_v63 }
  0xf8   : > { %v545_v29 = vmax.f32 %v529_v22, %v541_v28  ;;  %1254 = vrot.lane.b32.xlu0 %v1253_v26, %s1451_s12  ;;  %v597_v30 = vld [vmem:[#allocation5] sm:$0xff] }
  0xf9   : > { %548 = vst.msk [vmem:[#allocation4 + $0x10] sm:$0xff] %vm404_vm0, %v544_v27  ;;  %v598_v32 = vld [vmem:[#allocation5 + $0x8] sm:$0xff] }
  0xfa   : > { %549 = vst.msk [vmem:[#allocation4 + $0x18] sm:$0xff] %vm404_vm0, %v545_v29  ;;  %v1258_v34 = vpack.i.bf16 %v598_v32, %v597_v30  ;;  %v562_v35 = vpop.xlane.xlu0 %561 }
  0xfb   : > { %v568_v36 = vmax.f32 %v552_v31, %v562_v35  ;;  %v565_v37 = vpop.xlane.xlu1 %564 }
  0xfc   : > { %1259 = vrot.lane.b32.xlu1 %v1258_v34, %s1452_s14  ;;  %1279 = vrot.lane.b32.xlu0 %v1258_v34, %s1451_s12  ;;  %v569_v38 = vmax.f32 %v553_v33, %v565_v37  ;;  %v587_v40 = vld [vmem:[#allocation3 + $0x10] sm:$0xff] }
  0xfd   : > { %572 = vst.msk [vmem:[#allocation5 + $0x10] sm:$0xff] %vm404_vm0, %v568_v36  ;;  %v588_v42 = vld [vmem:[#allocation3 + $0x18] sm:$0xff]  ;;  %v1722_v43 = vmul.f32 0.00390625, %v587_v40 }
  0xfe   : > { %573 = vst.msk [vmem:[#allocation5 + $0x18] sm:$0xff] %vm404_vm0, %v569_v38  ;;  %v483_v44 = vpop.xlane.xlu0 %482  ;;  %v1725_v45 = vmul.f32 0.00390625, %v588_v42 }
  0xff   : > { %v486_v46 = vpop.xlane.xlu1 %485  ;;  %v493_v47 = vadd.f32 %v483_v44, %v477_v39 }
 0x100   : > { %v494_v49 = vadd.f32 %v486_v46, %v478_v41  ;;  %v1283_v50 = vpack.i.bf16 %v1725_v45, %v1722_v43  ;;  %v595_v51 = vld [vmem:[#allocation4 + $0x10] sm:$0xff] }
 0x101   : > { %498 = vst.msk [vmem:[#allocation2] sm:$0xff] %vm404_vm0, %v493_v47  ;;  %v596_v54 = vld [vmem:[#allocation4 + $0x18] sm:$0xff] }
 0x102   : > { %499 = vst.msk [vmem:[#allocation2 + $0x8] sm:$0xff] %vm404_vm0, %v494_v49  ;;  %1284 = vrot.lane.b32.xlu0 %v1283_v50, %s1454_s19  ;;  %v1263_v57 = vpack.i.bf16 %v596_v54, %v595_v51  ;;  %v489_v58 = vpop.xlane.xlu0 %488 }
 0x103   : > { %v492_v60 = vpop.xlane.xlu1 %491  ;;  %v495_v61 = vadd.f32 %v489_v58, %v479_v52 }
 0x104   : > { %1264 = vrot.lane.b32.xlu1 %v1263_v57, %s1451_s12  ;;  %v496_v62 = vadd.f32 %v492_v60, %v480_v55  ;;  %v599_v2 = vld [vmem:[#allocation5 + $0x10] sm:$0xff] }
 0x105   : > { %500 = vst.msk [vmem:[#allocation2 + $0x10] sm:$0xff] %vm404_vm0, %v495_v61  ;;  %v600_v3 = vld [vmem:[#allocation5 + $0x18] sm:$0xff] }
 0x106   : > { %501 = vst.msk [vmem:[#allocation2 + $0x18] sm:$0xff] %vm404_vm0, %v496_v62  ;;  %1289 = vrot.lane.b32.xlu0 %v1253_v26, %s1452_s14  ;;  %v1273_v7 = vpack.i.bf16 %v600_v3, %v599_v2 }
 0x108   : > { %1269 = vrot.lane.b32.xlu1 %v1268_v0, %s1454_s19  ;;  %v577_v4 = vld [vmem:[#allocation2] sm:$0xff] }
 0x109   : > { %v578_v5 = vld [vmem:[#allocation2 + $0x8] sm:$0xff]  ;;  %v581_v6 = vmul.f32 0.00390625, %v577_v4 }
 0x10a   : > { %v582_v8 = vmul.f32 0.00390625, %v578_v5 }
 0x10c   : > { %1274 = vrot.lane.b32.xlu1 %v1273_v7, %s1452_s14  ;;  %v1293_v9 = vpack.i.bf16 %v582_v8, %v581_v6  ;;  %v579_v10 = vld [vmem:[#allocation2 + $0x10] sm:$0xff] }
 0x10d   : > { %v580_v11 = vld [vmem:[#allocation2 + $0x18] sm:$0xff]  ;;  %v583_v12 = vmul.f32 0.00390625, %v579_v10 }
 0x10e   : > { %v584_v13 = vmul.f32 0.00390625, %v580_v11 }
 0x110   : > { %1294 = vrot.lane.b32.xlu1 %v1293_v9, %s1454_s19  ;;  %v1303_v14 = vpack.i.bf16 %v584_v13, %v583_v12 }
 0x112   : > { %1304 = vrot.lane.b32.xlu0 %v1303_v14, %s1454_s19 }
 0x114   : > { %1299 = vrot.lane.b32.xlu1 %v1273_v7, %s1451_s12  ;;  %s399_s12 = scalar_lea.vmem %s1844_s6, %s1129_s13 }
 0x118   : > { %1309 = vrot.lane.b32.xlu1 %v1263_v57, %s1452_s14 }
 0x16a   : > { %v1255_v15 = vpop.permute.xlu0 %1254 }
 0x16b   : > { %v1257_v19 = vunpack.i.h.bf16 %v1255_v15  ;;  %v1256_v20 = vunpack.i.l.bf16 %v1255_v15 }
 0x16d   : > { %v649_v1 = vsel %vm404_vm0, %v581_v6, %v1256_v20  ;;  %v650_v27 = vsel %vm404_vm0, %v582_v8, %v1257_v19  ;;  %v792_v20 = vld [vmem:[%s1843_s5 + $0x8] sm:$0xff] }
 0x16e   : > { %v1260_v16 = vpop.permute.xlu1 %1259  ;;  %v1280_v18 = vpop.permute.xlu0 %1279 }
 0x16f   : > { %v1262_v28 = vunpack.i.h.bf16 %v1260_v16  ;;  %v1261_v29 = vunpack.i.l.bf16 %v1260_v16  ;;  %v1282_v42 = vunpack.i.h.bf16 %v1280_v18  ;;  %v1281_v44 = vunpack.i.l.bf16 %v1280_v18 }
 0x171   : > { %v703_v56 = vsel %vm404_vm0, %v1736_v63, %v1281_v44  ;;  %v704_v57 = vsel %vm404_vm0, %v1733_v59, %v1282_v42 }
 0x174   : > { %v1285_v24 = vpop.permute.xlu0 %1284 }
 0x175   : > { %v1287_v34 = vunpack.i.h.bf16 %v1285_v24  ;;  %v1286_v35 = vunpack.i.l.bf16 %v1285_v24 }
 0x176   : > { %v1265_v17 = vpop.permute.xlu1 %1264 }
 0x177   : > { %v1267_v21 = vunpack.i.h.bf16 %v1265_v17  ;;  %v1266_v22 = vunpack.i.l.bf16 %v1265_v17 }
 0x178   : > { %v1290_v48 = vpop.permute.xlu0 %1289 }
 0x179   : > { %v651_v30 = vsel %vm404_vm0, %v583_v12, %v1266_v22  ;;  %v652_v31 = vsel %vm404_vm0, %v584_v13, %v1267_v21  ;;  %v1292_v58 = vunpack.i.h.bf16 %v1290_v48  ;;  %v1291_v60 = vunpack.i.l.bf16 %v1290_v48  ;;  %v793_v21 = vld [vmem:[%s1843_s5 + $0x10] sm:$0xff]  ;;  %v794_v22 = vld [vmem:[%s1843_s5 + $0x18] sm:$0xff] }
 0x17a   : > { %v1270_v23 = vpop.permute.xlu1 %1269  ;;  %v656_v46 = vsel %vm653_vm2, %v651_v30, %v1286_v35  ;;  %v657_v47 = vsel %vm653_vm2, %v652_v31, %v1287_v34 }
 0x17b   : > { %v1272_v25 = vunpack.i.h.bf16 %v1270_v23  ;;  %v1271_v26 = vunpack.i.l.bf16 %v1270_v23 }
 0x17d   : > { %v654_v32 = vsel %vm653_vm2, %v649_v1, %v1271_v26  ;;  %v655_v33 = vsel %vm653_vm2, %v650_v27, %v1272_v25 }
 0x17e   : > { %v1275_v36 = vpop.permute.xlu1 %1274  ;;  %v659_v37 = vsel %vm658_vm3, %v654_v32, %v1261_v29  ;;  %v660_v38 = vsel %vm658_vm3, %v655_v33, %v1262_v28 }
 0x17f   : > { %v1277_v39 = vunpack.i.h.bf16 %v1275_v36  ;;  %v1276_v40 = vunpack.i.l.bf16 %v1275_v36  ;;  %v1172_v41 = vpack.c.bf16 %v660_v38, %v659_v37 }
 0x181   : > { %1173 = vmatpush3.bf16.msra.mxu0 %v1172_v41  ;;  %v661_v49 = vsel %vm658_vm3, %v656_v46, %v1276_v40  ;;  %v662_v50 = vsel %vm658_vm3, %v657_v47, %v1277_v39 }
 0x182   : > { %v1295_v51 = vpop.permute.xlu1 %1294  ;;  %1174 = vmatprep.subr.bf16.mxu0 %v1453_v53  ;;  %v1175_v52 = vpack.c.bf16 %v662_v50, %v661_v49 }
 0x183   : > { %v1297_v54 = vunpack.i.h.bf16 %v1295_v51  ;;  %v1296_v55 = vunpack.i.l.bf16 %v1295_v51 }
 0x184   : > { %v1305_v0 = vpop.permute.xlu0 %1304 }
 0x185   : > { %v708_v61 = vsel %vm653_vm2, %v704_v57, %v1297_v54  ;;  %v707_v62 = vsel %vm653_vm2, %v703_v56, %v1296_v55  ;;  %1176 = vmatpush3.bf16.msra.mxu0 %v1175_v52  ;;  %v1307_v7 = vunpack.i.h.bf16 %v1305_v0  ;;  %v1306_v59 = vunpack.i.l.bf16 %v1305_v0 }
 0x186   : > { %v1300_v2 = vpop.permute.xlu1 %1299  ;;  %1177 = vmatprep.subr.bf16.mxu0 %v1453_v53  ;;  %v711_v3 = vsel %vm658_vm3, %v707_v62, %v1291_v60  ;;  %v712_v4 = vsel %vm658_vm3, %v708_v61, %v1292_v58 }
 0x187   : > { %v1302_v5 = vunpack.i.h.bf16 %v1300_v2  ;;  %v1301_v63 = vunpack.i.l.bf16 %v1300_v2  ;;  %v1178_v6 = vpack.c.bf16 %v712_v4, %v711_v3 }
 0x189   : > { %v706_v8 = vsel %vm404_vm0, %v1725_v45, %v1302_v5  ;;  %v705_v9 = vsel %vm404_vm0, %v1722_v43, %v1301_v63  ;;  %1179 = vmatpush3.bf16.msra.mxu0 %v1178_v6  ;;  %v715_v43 = vld [vmem:[%s1842_s4] sm:$0x3] }
 0x18a   : > { %v1310_v10 = vpop.permute.xlu1 %1309  ;;  %1180 = vmatprep.subr.bf16.mxu0 %v1453_v53  ;;  %v709_v13 = vsel %vm653_vm2, %v705_v9, %v1306_v59  ;;  %v710_v14 = vsel %vm653_vm2, %v706_v8, %v1307_v7  ;;  %v791_v45 = vld [vmem:[%s1843_s5] sm:$0xff] }
 0x18b   : > { %v1312_v11 = vunpack.i.h.bf16 %v1310_v10  ;;  %v1311_v12 = vunpack.i.l.bf16 %v1310_v10  ;;  %1165 = vmatprep.mubr.msk.f32.mxu1 %vm653_vm2, %v791_v45 }
 0x18d   : > { %v713_v15 = vsel %vm658_vm3, %v709_v13, %v1311_v12  ;;  %v714_v16 = vsel %vm658_vm3, %v710_v14, %v1312_v11 }
 0x18e   : > { %v1181_v17 = vpack.c.bf16 %v714_v16, %v713_v15 }
 0x190   : > { %1182 = vmatpush3.bf16.msra.mxu0 %v1181_v17 }
 0x193   : > { %1161 = vmatmul.mubr.msk.f32.vlgmr.msra.gmra.mrb[0].mxu0 %vm716_vm4, %v715_v43 }
 0x266   : > { %v786_v53 = vpop.f32.mrb[0].mxu0 }
 0x267   : > { %v790_v18 = vmax.f32 %v786_v53, 0.0  ;;  %v1162_v19 = vpop.f32.mrb[1].mxu0 }
 0x269   : > { %1163 = vmatprep.subr.msk.mxu1 %vm807_vm5, %v790_v18 }
 0x26a   : > { %1164 = vmatpush3.msk.msra.mxu1 %vm807_vm5, %v790_v18 }
 0x26b   : > { %1166 = vmatmul.mubr.msk.f32.vlgmr.msra.gmra.mrb[0].mxu1 %vm653_vm2, %v792_v20 }
 0x26c   : > { %1168 = vmatprep.mubr.msk.f32.mxu1 %vm653_vm2, %v793_v21 }
 0x26f   : > { %1169 = vmatmul.mubr.msk.f32.gmra.mrb[2].mxu1 %vm653_vm2, %v794_v22 }
 0x33e   : > { %v1167_v23 = vpop.f32.mrb[0].mxu1 }
 0x33f   : > { %902 = vrot.lane.b32.xlu1 %v1167_v23, %s1456_s29  ;;  %v877_v24 = vpop.f32.mrb[1].mxu1 }
 0x340   : > { %900 = vrot.lane.b32.xlu0 %v877_v24, %s1456_s29 }
 0x342   : > { %v1170_v25 = vpop.f32.mrb[2].mxu1 }
 0x343   : > { %906 = vrot.lane.b32.xlu1 %v1170_v25, %s1456_s29  ;;  %v887_v26 = vpop.f32.mrb[3].mxu1 }
 0x344   : > { %904 = vrot.lane.b32.xlu0 %v887_v26, %s1456_s29 }
 0x3b1   : > { %v903_v1 = vpop.permute.xlu1 %902 }
 0x3b2   : > { %v913_v27 = vadd.f32 %v1167_v23, %v903_v1  ;;  %v901_v28 = vpop.permute.xlu0 %900 }
 0x3b3   : > { %v912_v29 = vadd.f32 %v901_v28, %v877_v24 }
 0x3b4   : > { %v1122_v30 = vmul.f32 -1.442695, %v913_v27 }
 0x3b5   : > { %v1121_v31 = vmul.f32 -1.442695, %v912_v29  ;;  %v907_v32 = vpop.permute.xlu1 %906 }
 0x3b6   : > { %1313 = vpow2.f32 %v1122_v30  ;;  %v915_v33 = vadd.f32 %v1170_v25, %v907_v32  ;;  %v905_v34 = vpop.permute.xlu0 %904 }
 0x3b7   : > { %1315 = vpow2.f32 %v1121_v31  ;;  %v914_v35 = vadd.f32 %v905_v34, %v887_v26 }
 0x3b8   : > { %v1124_v36 = vmul.f32 -1.442695, %v915_v33 }
 0x3b9   : > { %v1123_v37 = vmul.f32 -1.442695, %v914_v35 }
 0x3ba   : > { %1317 = vpow2.f32 %v1124_v36 }
 0x3bb   : > { %1319 = vpow2.f32 %v1123_v37 }
 0x3c0   : > { %v1314_v38 = vpop.eup %1313 }
 0x3c1   : > { %v1316_v39 = vpop.eup %1315  ;;  %v929_v40 = vadd.f32 1.0, %v1314_v38 }
 0x3c2   : > { %v928_v41 = vadd.f32 1.0, %v1316_v39 }
 0x3c3   : > { %1321 = vrcp.f32 %v929_v40 }
 0x3c4   : > { %v1318_v42 = vpop.eup %1317  ;;  %1323 = vrcp.f32 %v928_v41 }
 0x3c5   : > { %v1320_v44 = vpop.eup %1319  ;;  %v931_v46 = vadd.f32 1.0, %v1318_v42 }
 0x3c6   : > { %v930_v47 = vadd.f32 1.0, %v1320_v44 }
 0x3c7   : > { %1325 = vrcp.f32 %v931_v46 }
 0x3c8   : > { %1327 = vrcp.f32 %v930_v47 }
 0x3cd   : > { %v1322_v48 = vpop.eup %1321 }
 0x3ce   : > { %v1324_v49 = vpop.eup %1323  ;;  %946 = vrot.lane.b32.xlu1 %v1322_v48, %s1456_s29 }
 0x3cf   : > { %944 = vrot.lane.b32.xlu0 %v1324_v49, %s1456_s29 }
 0x3d1   : > { %v1326_v50 = vpop.eup %1325 }
 0x3d2   : > { %v1328_v51 = vpop.eup %1327  ;;  %950 = vrot.lane.b32.xlu1 %v1326_v50, %s1456_s29 }
 0x3d3   : > { %948 = vrot.lane.b32.xlu0 %v1328_v51, %s1456_s29 }
 0x440   : > { %v947_v52 = vpop.permute.xlu1 %946 }
 0x441   : > { %v957_v54 = vsel %vm404_vm0, %v1322_v48, %v947_v52  ;;  %v945_v55 = vpop.permute.xlu0 %944 }
 0x442   : > { %961 = vst.msk [vmem:[%s399_s12 + $0x8] sm:$0xff] %vm653_vm2, %v957_v54  ;;  %v956_v56 = vsel %vm404_vm0, %v1324_v49, %v945_v55 }
 0x443   : > { %960 = vst.msk [vmem:[%s399_s12] sm:$0xff] %vm653_vm2, %v956_v56 }
 0x444   : > { %v951_v57 = vpop.permute.xlu1 %950 }
 0x445   : > { %v959_v58 = vsel %vm404_vm0, %v1326_v50, %v951_v57  ;;  %v949_v60 = vpop.permute.xlu0 %948 }
 0x446   : > { %963 = vst.msk [vmem:[%s399_s12 + $0x18] sm:$0xff] %vm653_vm2, %v959_v58  ;;  %v958_v61 = vsel %vm404_vm0, %v1328_v51, %v949_v60 }
 0x447   : > { %962 = vst.msk [vmem:[%s399_s12 + $0x10] sm:$0xff] %vm653_vm2, %v958_v61 }
 0x448 PF: > { %s22_s26 = sadd.s32 1, %s1443_s26   ;;  %s1851_s21 = smov %s1427_s22 }
 0x449   : > { %p19_p11 = scmp.ge.s32.totalorder %s22_s26, 4   ;;  %s1852_s22 = smov %s1431_s23 }
 0x44a   : > { %s1853_s23 = smov %s1541_s9  ;;  %s1854_s24 = smov %s1439_s25 }
 0x44b   : > { %s1855_s25 = smov %s1857_s28  ;;  %21 = sbr.rel (!%p19_p11) target bundleno = 6 (0x6), region = 111 }
 0x452   :  { %985 = vsyncpa [#allocation7], 1 }
 0x453   :  { %987 = vsyncpa [#allocation7 + $0x1], 1 }
 0x454   :  { %988 = vsyncpa [#allocation9], 1 }
 0x455   :  { %990 = vsyncpa [#allocation9 + $0x1], 1 }

</bundles_post_ra>
